<compile_context>
chip_gen: v7x
topology: tpu7x:2x2x1
jax: 0.10.0
libtpu: 0.0.40
codegen_flags: <defaults>
</compile_context>

<pallas_src>
from functools import partial

import jax
import jax.numpy as jnp
from jax import lax
from jax.experimental import pallas as pl
from jax.experimental.pallas import tpu as pltpu


def _cope_kernel(q_ref, k_ref, wk_ref, pe_ref, tri_ref, out_ref, *,
                 scale, npos_max, compute_dtype):
    q = q_ref[0]          # (TQ, D) f32  -- row tile of queries
    k = k_ref[0]          # (S, D)  f32  -- full key slab for this batch-head
    wk = wk_ref[...]      # (D, D)
    pe = pe_ref[...]      # (D, P)
    tri = tri_ref[...]    # (S, S) f32 lower-triangular ones (tri[k, j] = k >= j)

    # key = key @ w_k   (bf16 inputs on v6e/v7x for MXU throughput, f32 accum)
    k_proj = jnp.dot(k.astype(compute_dtype), wk.astype(compute_dtype),
                     preferred_element_type=jnp.float32)            # (S, D)

    # attn = (q * scale) @ k_proj^T without materializing a transpose:
    attn = lax.dot_general(
        (q * scale).astype(compute_dtype), k_proj.astype(compute_dtype),
        dimension_numbers=(((1,), (1,)), ((), ())),
        preferred_element_type=jnp.float32)                          # (TQ, S)

    gates = jax.nn.sigmoid(attn)                                     # (TQ, S)

    # pos = gates.flip(-1).cumsum(-1).flip(-1)  (suffix sum over key axis),
    # expressed as an MXU matmul with the resident triangular mask. Kept in
    # f32 because pos is bucketed (hat basis) below.
    # TODO(synk): for very large S on v7x (64 MiB VMEM), replace this with
    # pos = row_total - exclusive_prefix_cumsum(gates) to free the resident
    # (S, S) mask.
    pos = jnp.dot(gates, tri, preferred_element_type=jnp.float32)    # (TQ, S)
    pos = jnp.minimum(pos, float(npos_max - 1))                      # clamp(max=)

    # logits_int = query @ pos_emb  (un-scaled query, f32, as in the reference)
    logits_int = jnp.dot(q, pe, preferred_element_type=jnp.float32)  # (TQ, P)

    # gather(-1, floor/ceil) + linear interpolation via hat-basis accumulation:
    #   out[i, j] = sum_p logits_int[i, p] * max(0, 1 - |pos[i, j] - p|)
    # Exactly equivalent because pos is clamped to [0, npos_max - 1]. P is a
    # small compile-time constant; per-iteration temporaries are not live
    # across iterations, so the static loop keeps vreg pressure bounded.
    out = jnp.zeros(pos.shape, jnp.float32)
    for p in range(npos_max):
        wt = jnp.maximum(0.0, 1.0 - jnp.abs(pos - float(p)))         # (TQ, S)
        out = out + logits_int[:, p:p + 1] * wt

    out_ref[0] = out


def _pick_row_tile(S, target=256):
    """Largest row tile <= target that divides S and keeps (8,128) tiling."""
    if S <= target:
        return S
    for tq in range(target, 0, -1):
        if S % tq == 0 and tq % 8 == 0:
            return tq
    return S


def cope_forward(query, attn_logits, key, value, pos_emb, w_k, *,
                 scale, npos_max, use_bf16_matmul=True, row_tile=None,
                 vmem_limit_bytes=None):
    """Pallas implementation of CoPE.forward (mode=1, is_cope_k=1).

    query/key/value: (B, H, S, D) float32. attn_logits & value are unused in
    mode 1 (the reference recomputes the logits); kept for signature parity.
    Returns (B, H, S, S) float32.
    """
    del attn_logits, value  # ignored in mode == 1
    B, H, S, D = query.shape
    P = int(npos_max)
    BH = B * H

    q = query.reshape(BH, S, D).astype(jnp.float32)
    k = key.reshape(BH, S, D).astype(jnp.float32)
    wk = w_k.reshape(D, D).astype(jnp.float32)
    pe = pos_emb.reshape(D, P).astype(jnp.float32)
    # Precomputed suffix-sum mask: tri[k, j] = 1.0 iff k >= j.
    tri = jnp.tril(jnp.ones((S, S), jnp.float32))

    TQ = int(row_tile) if row_tile is not None else _pick_row_tile(S)
    assert S % TQ == 0, f"row tile {TQ} must divide S={S}"

    compute_dtype = jnp.bfloat16 if use_bf16_matmul else jnp.float32
    kernel = partial(_cope_kernel, scale=float(scale), npos_max=P,
                     compute_dtype=compute_dtype)

    cp_kwargs = dict(dimension_semantics=("parallel", "parallel"))
    if vmem_limit_bytes is not None:
        cp_kwargs["vmem_limit_bytes"] = int(vmem_limit_bytes)

    out = pl.pallas_call(
        kernel,
        out_shape=jax.ShapeDtypeStruct((BH, S, S), jnp.float32),
        grid=(BH, S // TQ),
        in_specs=[
            pl.BlockSpec((1, TQ, D), lambda i, r: (i, r, 0)),   # query row tile
            pl.BlockSpec((1, S, D), lambda i, r: (i, 0, 0)),    # full key slab
            pl.BlockSpec((D, D), lambda i, r: (0, 0)),          # w_k (shared)
            pl.BlockSpec((D, P), lambda i, r: (0, 0)),          # pos_emb (shared)
            pl.BlockSpec((S, S), lambda i, r: (0, 0)),          # tri mask (resident)
        ],
        out_specs=pl.BlockSpec((1, TQ, S), lambda i, r: (i, r, 0)),
        compiler_params=pltpu.CompilerParams(**cp_kwargs),
    )(q, k, wk, pe, tri)

    return out.reshape(B, H, S, S)


def cope_reference(query, key, pos_emb, w_k, *, scale, npos_max):
    """Pure-JAX transcription of the PyTorch forward (mode=1, is_cope_k=1)."""
    k = jnp.matmul(key, w_k)                                  # (B,H,S,D) @ (1,D,D)
    attn = jnp.matmul(query * scale, jnp.swapaxes(k, -2, -1))
    gates = jax.nn.sigmoid(attn)
    pos = jnp.flip(jnp.cumsum(jnp.flip(gates, -1), -1), -1)
    pos = jnp.minimum(pos, npos_max - 1)
    pos_ceil = jnp.ceil(pos).astype(jnp.int32)
    pos_floor = jnp.floor(pos).astype(jnp.int32)
    logits_int = jnp.matmul(query, pos_emb)                   # (B,H,S,P)
    logits_ceil = jnp.take_along_axis(logits_int, pos_ceil, axis=-1)
    logits_floor = jnp.take_along_axis(logits_int, pos_floor, axis=-1)
    w = pos - pos_floor
    return logits_ceil * w + logits_floor * (1.0 - w)


if __name__ == "__main__":
    B, H, S, D = 2, 2, 8, 32
    NPOS_MAX = 16
    SCALE = D ** -0.5

    key0 = jax.random.PRNGKey(0)
    k_q, k_k, k_v, k_pe, k_wk = jax.random.split(key0, 5)

    query = jax.random.normal(k_q, (B, H, S, D), dtype=jnp.float32)
    key_t = jax.random.normal(k_k, (B, H, S, D), dtype=jnp.float32)
    value = jax.random.normal(k_v, (B, H, S, D), dtype=jnp.float32)
    attn_logits = jnp.zeros((B, H, S, S), dtype=jnp.float32)  # unused in mode 1

    # Parameters: __init__ uses zeros; use small deterministic random values so
    # the synthetic test exercises non-trivial gating / interpolation.
    pos_emb = 0.1 * jax.random.normal(k_pe, (1, D, NPOS_MAX), dtype=jnp.float32)
    w_k = 0.1 * jax.random.normal(k_wk, (1, D, D), dtype=jnp.float32)

    ref = cope_reference(query, key_t, pos_emb, w_k, scale=SCALE,
                         npos_max=NPOS_MAX)
    ref = jax.block_until_ready(ref)

    # Tight check: all-f32 compute path.
    out_f32 = cope_forward(query, attn_logits, key_t, value, pos_emb, w_k,
                           scale=SCALE, npos_max=NPOS_MAX,
                           use_bf16_matmul=False)
    out_f32 = jax.block_until_ready(out_f32)
    assert out_f32.shape == (B, H, S, S)
    assert jnp.allclose(out_f32, ref, atol=1e-4, rtol=1e-4), (
        f"f32 path max abs diff {jnp.max(jnp.abs(out_f32 - ref))}")

    # Default (performance) path: bf16 projection/attention matmuls.
    out_bf16 = cope_forward(query, attn_logits, key_t, value, pos_emb, w_k,
                            scale=SCALE, npos_max=NPOS_MAX,
                            use_bf16_matmul=True)
    out_bf16 = jax.block_until_ready(out_bf16)
    assert out_bf16.shape == (B, H, S, S)
    assert jnp.allclose(out_bf16, ref, atol=5e-2, rtol=5e-2), (
        f"bf16 path max abs diff {jnp.max(jnp.abs(out_bf16 - ref))}")

    print("KERNEL_OK")
</pallas_src>

<mosaic_0001>
module attributes {stable_mosaic.version = 11 : i64} {
  func.func @_cope_kernel(%arg0: i32, %arg1: i32, %arg2: memref<1x8x32xf32, #tpu.memory_space<vmem>>, %arg3: memref<1x8x32xf32, #tpu.memory_space<vmem>>, %arg4: memref<32x32xf32, #tpu.memory_space<vmem>>, %arg5: memref<32x16xf32, #tpu.memory_space<vmem>>, %arg6: memref<8x8xf32, #tpu.memory_space<vmem>>, %arg7: memref<1x8x8xf32, #tpu.memory_space<vmem>>) attributes {dimension_semantics = [#tpu.dimension_semantics<parallel>, #tpu.dimension_semantics<parallel>], iteration_bounds = array<i64: 4, 1>, scalar_prefetch = 0 : i64, scratch_operands = 0 : i64, tpu.core_type = #tpu.core_type<tc>, window_params = [{transform_indices = @transform_0, window_bounds = array<i64: 1, 8, 32>}, {transform_indices = @transform_1, window_bounds = array<i64: 1, 8, 32>}, {pipeline_mode = #tpu.pipeline_mode<synchronous>, transform_indices = @transform_2, window_bounds = array<i64: 32, 32>}, {pipeline_mode = #tpu.pipeline_mode<synchronous>, transform_indices = @transform_3, window_bounds = array<i64: 32, 16>}, {pipeline_mode = #tpu.pipeline_mode<synchronous>, transform_indices = @transform_4, window_bounds = array<i64: 8, 8>}, {transform_indices = @transform_5, window_bounds = array<i64: 1, 8, 8>}]} {
    %c0 = arith.constant 0 : index
    %c0_0 = arith.constant 0 : index
    %c0_1 = arith.constant 0 : index
    %0 = vector.load %arg2[%c0, %c0_0, %c0_1] : memref<1x8x32xf32, #tpu.memory_space<vmem>>, vector<1x8x32xf32>
    %1 = vector.shape_cast %0 : vector<1x8x32xf32> to vector<8x32xf32>
    %c0_2 = arith.constant 0 : index
    %c0_3 = arith.constant 0 : index
    %c0_4 = arith.constant 0 : index
    %2 = vector.load %arg3[%c0_2, %c0_3, %c0_4] : memref<1x8x32xf32, #tpu.memory_space<vmem>>, vector<1x8x32xf32>
    %3 = vector.shape_cast %2 : vector<1x8x32xf32> to vector<8x32xf32>
    %c0_5 = arith.constant 0 : index
    %c0_6 = arith.constant 0 : index
    %4 = vector.load %arg4[%c0_5, %c0_6] : memref<32x32xf32, #tpu.memory_space<vmem>>, vector<32x32xf32>
    %c0_7 = arith.constant 0 : index
    %c0_8 = arith.constant 0 : index
    %5 = vector.load %arg5[%c0_7, %c0_8] : memref<32x16xf32, #tpu.memory_space<vmem>>, vector<32x16xf32>
    %c0_9 = arith.constant 0 : index
    %c0_10 = arith.constant 0 : index
    %6 = vector.load %arg6[%c0_9, %c0_10] : memref<8x8xf32, #tpu.memory_space<vmem>>, vector<8x8xf32>
    %cst = arith.constant dense<0.000000e+00> : vector<8x32xf32>
    %7 = tpu.matmul %3, %4, %cst {dimension_numbers = #tpu.dot_dimension_numbers<[1], [0], [0], [1], [0, 0, 1, 1], [], []>} : vector<8x32xf32>, vector<32x32xf32>, vector<8x32xf32> -> vector<8x32xf32>
    %cst_11 = arith.constant 0.176776692 : f32
    %8 = vector.broadcast %cst_11 : f32 to vector<8x32xf32>
    %9 = arith.mulf %1, %8 : vector<8x32xf32>
    %cst_12 = arith.constant dense<0.000000e+00> : vector<8x8xf32>
    %10 = tpu.matmul %9, %7, %cst_12 {dimension_numbers = #tpu.dot_dimension_numbers<[1], [1], [0], [0], [0, 0, 1, 0], [], []>} : vector<8x32xf32>, vector<8x32xf32>, vector<8x8xf32> -> vector<8x8xf32>
    %11 = arith.negf %10 : vector<8x8xf32>
    %12 = math.exp %11 : vector<8x8xf32>
    %cst_13 = arith.constant 1.000000e+00 : f32
    %13 = vector.broadcast %cst_13 : f32 to vector<8x8xf32>
    %14 = arith.addf %13, %12 : vector<8x8xf32>
    %15 = arith.divf %13, %14 : vector<8x8xf32>
    %cst_14 = arith.constant dense<0.000000e+00> : vector<8x8xf32>
    %16 = tpu.matmul %15, %6, %cst_14 {dimension_numbers = #tpu.dot_dimension_numbers<[1], [0], [0], [1], [0, 0, 1, 1], [], []>} : vector<8x8xf32>, vector<8x8xf32>, vector<8x8xf32> -> vector<8x8xf32>
    %cst_15 = arith.constant 1.500000e+01 : f32
    %17 = vector.broadcast %cst_15 : f32 to vector<8x8xf32>
    %18 = arith.minimumf %16, %17 : vector<8x8xf32>
    %cst_16 = arith.constant dense<0.000000e+00> : vector<8x16xf32>
    %19 = tpu.matmul %1, %5, %cst_16 {dimension_numbers = #tpu.dot_dimension_numbers<[1], [0], [0], [1], [0, 0, 1, 1], [], []>} : vector<8x32xf32>, vector<32x16xf32>, vector<8x16xf32> -> vector<8x16xf32>
    %cst_17 = arith.constant 0.000000e+00 : f32
    %20 = vector.broadcast %cst_17 : f32 to vector<8x8xf32>
    %cst_18 = arith.constant 0.000000e+00 : f32
    %21 = vector.broadcast %cst_18 : f32 to vector<8x8xf32>
    %22 = arith.subf %18, %21 : vector<8x8xf32>
    %23 = math.absf %22 : vector<8x8xf32>
    %cst_19 = arith.constant 1.000000e+00 : f32
    %24 = vector.broadcast %cst_19 : f32 to vector<8x8xf32>
    %25 = arith.subf %24, %23 : vector<8x8xf32>
    %cst_20 = arith.constant 0.000000e+00 : f32
    %26 = vector.broadcast %cst_20 : f32 to vector<8x8xf32>
    %27 = arith.maximumf %26, %25 : vector<8x8xf32>
    %28 = vector.extract_strided_slice %19 {offsets = [0, 0], sizes = [8, 1], strides = [1, 1]} : vector<8x16xf32> to vector<8x1xf32>
    %29 = vector.broadcast %28 : vector<8x1xf32> to vector<8x8xf32>
    %30 = arith.mulf %29, %27 : vector<8x8xf32>
    %31 = arith.addf %20, %30 : vector<8x8xf32>
    %cst_21 = arith.constant 1.000000e+00 : f32
    %32 = vector.broadcast %cst_21 : f32 to vector<8x8xf32>
    %33 = arith.subf %18, %32 : vector<8x8xf32>
    %34 = math.absf %33 : vector<8x8xf32>
    %cst_22 = arith.constant 1.000000e+00 : f32
    %35 = vector.broadcast %cst_22 : f32 to vector<8x8xf32>
    %36 = arith.subf %35, %34 : vector<8x8xf32>
    %cst_23 = arith.constant 0.000000e+00 : f32
    %37 = vector.broadcast %cst_23 : f32 to vector<8x8xf32>
    %38 = arith.maximumf %37, %36 : vector<8x8xf32>
    %39 = vector.extract_strided_slice %19 {offsets = [0, 1], sizes = [8, 1], strides = [1, 1]} : vector<8x16xf32> to vector<8x1xf32>
    %40 = vector.broadcast %39 : vector<8x1xf32> to vector<8x8xf32>
    %41 = arith.mulf %40, %38 : vector<8x8xf32>
    %42 = arith.addf %31, %41 : vector<8x8xf32>
    %cst_24 = arith.constant 2.000000e+00 : f32
    %43 = vector.broadcast %cst_24 : f32 to vector<8x8xf32>
    %44 = arith.subf %18, %43 : vector<8x8xf32>
    %45 = math.absf %44 : vector<8x8xf32>
    %cst_25 = arith.constant 1.000000e+00 : f32
    %46 = vector.broadcast %cst_25 : f32 to vector<8x8xf32>
    %47 = arith.subf %46, %45 : vector<8x8xf32>
    %cst_26 = arith.constant 0.000000e+00 : f32
    %48 = vector.broadcast %cst_26 : f32 to vector<8x8xf32>
    %49 = arith.maximumf %48, %47 : vector<8x8xf32>
    %50 = vector.extract_strided_slice %19 {offsets = [0, 2], sizes = [8, 1], strides = [1, 1]} : vector<8x16xf32> to vector<8x1xf32>
    %51 = vector.broadcast %50 : vector<8x1xf32> to vector<8x8xf32>
    %52 = arith.mulf %51, %49 : vector<8x8xf32>
    %53 = arith.addf %42, %52 : vector<8x8xf32>
    %cst_27 = arith.constant 3.000000e+00 : f32
    %54 = vector.broadcast %cst_27 : f32 to vector<8x8xf32>
    %55 = arith.subf %18, %54 : vector<8x8xf32>
    %56 = math.absf %55 : vector<8x8xf32>
    %cst_28 = arith.constant 1.000000e+00 : f32
    %57 = vector.broadcast %cst_28 : f32 to vector<8x8xf32>
    %58 = arith.subf %57, %56 : vector<8x8xf32>
    %cst_29 = arith.constant 0.000000e+00 : f32
    %59 = vector.broadcast %cst_29 : f32 to vector<8x8xf32>
    %60 = arith.maximumf %59, %58 : vector<8x8xf32>
    %61 = vector.extract_strided_slice %19 {offsets = [0, 3], sizes = [8, 1], strides = [1, 1]} : vector<8x16xf32> to vector<8x1xf32>
    %62 = vector.broadcast %61 : vector<8x1xf32> to vector<8x8xf32>
    %63 = arith.mulf %62, %60 : vector<8x8xf32>
    %64 = arith.addf %53, %63 : vector<8x8xf32>
    %cst_30 = arith.constant 4.000000e+00 : f32
    %65 = vector.broadcast %cst_30 : f32 to vector<8x8xf32>
    %66 = arith.subf %18, %65 : vector<8x8xf32>
    %67 = math.absf %66 : vector<8x8xf32>
    %cst_31 = arith.constant 1.000000e+00 : f32
    %68 = vector.broadcast %cst_31 : f32 to vector<8x8xf32>
    %69 = arith.subf %68, %67 : vector<8x8xf32>
    %cst_32 = arith.constant 0.000000e+00 : f32
    %70 = vector.broadcast %cst_32 : f32 to vector<8x8xf32>
    %71 = arith.maximumf %70, %69 : vector<8x8xf32>
    %72 = vector.extract_strided_slice %19 {offsets = [0, 4], sizes = [8, 1], strides = [1, 1]} : vector<8x16xf32> to vector<8x1xf32>
    %73 = vector.broadcast %72 : vector<8x1xf32> to vector<8x8xf32>
    %74 = arith.mulf %73, %71 : vector<8x8xf32>
    %75 = arith.addf %64, %74 : vector<8x8xf32>
    %cst_33 = arith.constant 5.000000e+00 : f32
    %76 = vector.broadcast %cst_33 : f32 to vector<8x8xf32>
    %77 = arith.subf %18, %76 : vector<8x8xf32>
    %78 = math.absf %77 : vector<8x8xf32>
    %cst_34 = arith.constant 1.000000e+00 : f32
    %79 = vector.broadcast %cst_34 : f32 to vector<8x8xf32>
    %80 = arith.subf %79, %78 : vector<8x8xf32>
    %cst_35 = arith.constant 0.000000e+00 : f32
    %81 = vector.broadcast %cst_35 : f32 to vector<8x8xf32>
    %82 = arith.maximumf %81, %80 : vector<8x8xf32>
    %83 = vector.extract_strided_slice %19 {offsets = [0, 5], sizes = [8, 1], strides = [1, 1]} : vector<8x16xf32> to vector<8x1xf32>
    %84 = vector.broadcast %83 : vector<8x1xf32> to vector<8x8xf32>
    %85 = arith.mulf %84, %82 : vector<8x8xf32>
    %86 = arith.addf %75, %85 : vector<8x8xf32>
    %cst_36 = arith.constant 6.000000e+00 : f32
    %87 = vector.broadcast %cst_36 : f32 to vector<8x8xf32>
    %88 = arith.subf %18, %87 : vector<8x8xf32>
    %89 = math.absf %88 : vector<8x8xf32>
    %cst_37 = arith.constant 1.000000e+00 : f32
    %90 = vector.broadcast %cst_37 : f32 to vector<8x8xf32>
    %91 = arith.subf %90, %89 : vector<8x8xf32>
    %cst_38 = arith.constant 0.000000e+00 : f32
    %92 = vector.broadcast %cst_38 : f32 to vector<8x8xf32>
    %93 = arith.maximumf %92, %91 : vector<8x8xf32>
    %94 = vector.extract_strided_slice %19 {offsets = [0, 6], sizes = [8, 1], strides = [1, 1]} : vector<8x16xf32> to vector<8x1xf32>
    %95 = vector.broadcast %94 : vector<8x1xf32> to vector<8x8xf32>
    %96 = arith.mulf %95, %93 : vector<8x8xf32>
    %97 = arith.addf %86, %96 : vector<8x8xf32>
    %cst_39 = arith.constant 7.000000e+00 : f32
    %98 = vector.broadcast %cst_39 : f32 to vector<8x8xf32>
    %99 = arith.subf %18, %98 : vector<8x8xf32>
    %100 = math.absf %99 : vector<8x8xf32>
    %cst_40 = arith.constant 1.000000e+00 : f32
    %101 = vector.broadcast %cst_40 : f32 to vector<8x8xf32>
    %102 = arith.subf %101, %100 : vector<8x8xf32>
    %cst_41 = arith.constant 0.000000e+00 : f32
    %103 = vector.broadcast %cst_41 : f32 to vector<8x8xf32>
    %104 = arith.maximumf %103, %102 : vector<8x8xf32>
    %105 = vector.extract_strided_slice %19 {offsets = [0, 7], sizes = [8, 1], strides = [1, 1]} : vector<8x16xf32> to vector<8x1xf32>
    %106 = vector.broadcast %105 : vector<8x1xf32> to vector<8x8xf32>
    %107 = arith.mulf %106, %104 : vector<8x8xf32>
    %108 = arith.addf %97, %107 : vector<8x8xf32>
    %cst_42 = arith.constant 8.000000e+00 : f32
    %109 = vector.broadcast %cst_42 : f32 to vector<8x8xf32>
    %110 = arith.subf %18, %109 : vector<8x8xf32>
    %111 = math.absf %110 : vector<8x8xf32>
    %cst_43 = arith.constant 1.000000e+00 : f32
    %112 = vector.broadcast %cst_43 : f32 to vector<8x8xf32>
    %113 = arith.subf %112, %111 : vector<8x8xf32>
    %cst_44 = arith.constant 0.000000e+00 : f32
    %114 = vector.broadcast %cst_44 : f32 to vector<8x8xf32>
    %115 = arith.maximumf %114, %113 : vector<8x8xf32>
    %116 = vector.extract_strided_slice %19 {offsets = [0, 8], sizes = [8, 1], strides = [1, 1]} : vector<8x16xf32> to vector<8x1xf32>
    %117 = vector.broadcast %116 : vector<8x1xf32> to vector<8x8xf32>
    %118 = arith.mulf %117, %115 : vector<8x8xf32>
    %119 = arith.addf %108, %118 : vector<8x8xf32>
    %cst_45 = arith.constant 9.000000e+00 : f32
    %120 = vector.broadcast %cst_45 : f32 to vector<8x8xf32>
    %121 = arith.subf %18, %120 : vector<8x8xf32>
    %122 = math.absf %121 : vector<8x8xf32>
    %cst_46 = arith.constant 1.000000e+00 : f32
    %123 = vector.broadcast %cst_46 : f32 to vector<8x8xf32>
    %124 = arith.subf %123, %122 : vector<8x8xf32>
    %cst_47 = arith.constant 0.000000e+00 : f32
    %125 = vector.broadcast %cst_47 : f32 to vector<8x8xf32>
    %126 = arith.maximumf %125, %124 : vector<8x8xf32>
    %127 = vector.extract_strided_slice %19 {offsets = [0, 9], sizes = [8, 1], strides = [1, 1]} : vector<8x16xf32> to vector<8x1xf32>
    %128 = vector.broadcast %127 : vector<8x1xf32> to vector<8x8xf32>
    %129 = arith.mulf %128, %126 : vector<8x8xf32>
    %130 = arith.addf %119, %129 : vector<8x8xf32>
    %cst_48 = arith.constant 1.000000e+01 : f32
    %131 = vector.broadcast %cst_48 : f32 to vector<8x8xf32>
    %132 = arith.subf %18, %131 : vector<8x8xf32>
    %133 = math.absf %132 : vector<8x8xf32>
    %cst_49 = arith.constant 1.000000e+00 : f32
    %134 = vector.broadcast %cst_49 : f32 to vector<8x8xf32>
    %135 = arith.subf %134, %133 : vector<8x8xf32>
    %cst_50 = arith.constant 0.000000e+00 : f32
    %136 = vector.broadcast %cst_50 : f32 to vector<8x8xf32>
    %137 = arith.maximumf %136, %135 : vector<8x8xf32>
    %138 = vector.extract_strided_slice %19 {offsets = [0, 10], sizes = [8, 1], strides = [1, 1]} : vector<8x16xf32> to vector<8x1xf32>
    %139 = vector.broadcast %138 : vector<8x1xf32> to vector<8x8xf32>
    %140 = arith.mulf %139, %137 : vector<8x8xf32>
    %141 = arith.addf %130, %140 : vector<8x8xf32>
    %cst_51 = arith.constant 1.100000e+01 : f32
    %142 = vector.broadcast %cst_51 : f32 to vector<8x8xf32>
    %143 = arith.subf %18, %142 : vector<8x8xf32>
    %144 = math.absf %143 : vector<8x8xf32>
    %cst_52 = arith.constant 1.000000e+00 : f32
    %145 = vector.broadcast %cst_52 : f32 to vector<8x8xf32>
    %146 = arith.subf %145, %144 : vector<8x8xf32>
    %cst_53 = arith.constant 0.000000e+00 : f32
    %147 = vector.broadcast %cst_53 : f32 to vector<8x8xf32>
    %148 = arith.maximumf %147, %146 : vector<8x8xf32>
    %149 = vector.extract_strided_slice %19 {offsets = [0, 11], sizes = [8, 1], strides = [1, 1]} : vector<8x16xf32> to vector<8x1xf32>
    %150 = vector.broadcast %149 : vector<8x1xf32> to vector<8x8xf32>
    %151 = arith.mulf %150, %148 : vector<8x8xf32>
    %152 = arith.addf %141, %151 : vector<8x8xf32>
    %cst_54 = arith.constant 1.200000e+01 : f32
    %153 = vector.broadcast %cst_54 : f32 to vector<8x8xf32>
    %154 = arith.subf %18, %153 : vector<8x8xf32>
    %155 = math.absf %154 : vector<8x8xf32>
    %cst_55 = arith.constant 1.000000e+00 : f32
    %156 = vector.broadcast %cst_55 : f32 to vector<8x8xf32>
    %157 = arith.subf %156, %155 : vector<8x8xf32>
    %cst_56 = arith.constant 0.000000e+00 : f32
    %158 = vector.broadcast %cst_56 : f32 to vector<8x8xf32>
    %159 = arith.maximumf %158, %157 : vector<8x8xf32>
    %160 = vector.extract_strided_slice %19 {offsets = [0, 12], sizes = [8, 1], strides = [1, 1]} : vector<8x16xf32> to vector<8x1xf32>
    %161 = vector.broadcast %160 : vector<8x1xf32> to vector<8x8xf32>
    %162 = arith.mulf %161, %159 : vector<8x8xf32>
    %163 = arith.addf %152, %162 : vector<8x8xf32>
    %cst_57 = arith.constant 1.300000e+01 : f32
    %164 = vector.broadcast %cst_57 : f32 to vector<8x8xf32>
    %165 = arith.subf %18, %164 : vector<8x8xf32>
    %166 = math.absf %165 : vector<8x8xf32>
    %cst_58 = arith.constant 1.000000e+00 : f32
    %167 = vector.broadcast %cst_58 : f32 to vector<8x8xf32>
    %168 = arith.subf %167, %166 : vector<8x8xf32>
    %cst_59 = arith.constant 0.000000e+00 : f32
    %169 = vector.broadcast %cst_59 : f32 to vector<8x8xf32>
    %170 = arith.maximumf %169, %168 : vector<8x8xf32>
    %171 = vector.extract_strided_slice %19 {offsets = [0, 13], sizes = [8, 1], strides = [1, 1]} : vector<8x16xf32> to vector<8x1xf32>
    %172 = vector.broadcast %171 : vector<8x1xf32> to vector<8x8xf32>
    %173 = arith.mulf %172, %170 : vector<8x8xf32>
    %174 = arith.addf %163, %173 : vector<8x8xf32>
    %cst_60 = arith.constant 1.400000e+01 : f32
    %175 = vector.broadcast %cst_60 : f32 to vector<8x8xf32>
    %176 = arith.subf %18, %175 : vector<8x8xf32>
    %177 = math.absf %176 : vector<8x8xf32>
    %cst_61 = arith.constant 1.000000e+00 : f32
    %178 = vector.broadcast %cst_61 : f32 to vector<8x8xf32>
    %179 = arith.subf %178, %177 : vector<8x8xf32>
    %cst_62 = arith.constant 0.000000e+00 : f32
    %180 = vector.broadcast %cst_62 : f32 to vector<8x8xf32>
    %181 = arith.maximumf %180, %179 : vector<8x8xf32>
    %182 = vector.extract_strided_slice %19 {offsets = [0, 14], sizes = [8, 1], strides = [1, 1]} : vector<8x16xf32> to vector<8x1xf32>
    %183 = vector.broadcast %182 : vector<8x1xf32> to vector<8x8xf32>
    %184 = arith.mulf %183, %181 : vector<8x8xf32>
    %185 = arith.addf %174, %184 : vector<8x8xf32>
    %cst_63 = arith.constant 1.500000e+01 : f32
    %186 = vector.broadcast %cst_63 : f32 to vector<8x8xf32>
    %187 = arith.subf %18, %186 : vector<8x8xf32>
    %188 = math.absf %187 : vector<8x8xf32>
    %cst_64 = arith.constant 1.000000e+00 : f32
    %189 = vector.broadcast %cst_64 : f32 to vector<8x8xf32>
    %190 = arith.subf %189, %188 : vector<8x8xf32>
    %cst_65 = arith.constant 0.000000e+00 : f32
    %191 = vector.broadcast %cst_65 : f32 to vector<8x8xf32>
    %192 = arith.maximumf %191, %190 : vector<8x8xf32>
    %193 = vector.extract_strided_slice %19 {offsets = [0, 15], sizes = [8, 1], strides = [1, 1]} : vector<8x16xf32> to vector<8x1xf32>
    %194 = vector.broadcast %193 : vector<8x1xf32> to vector<8x8xf32>
    %195 = arith.mulf %194, %192 : vector<8x8xf32>
    %196 = arith.addf %185, %195 : vector<8x8xf32>
    %c0_66 = arith.constant 0 : index
    %c0_67 = arith.constant 0 : index
    %c0_68 = arith.constant 0 : index
    %197 = vector.load %arg7[%c0_66, %c0_67, %c0_68] : memref<1x8x8xf32, #tpu.memory_space<vmem>>, vector<1x8x8xf32>
    %198 = vector.shape_cast %197 : vector<1x8x8xf32> to vector<8x8xf32>
    %199 = vector.shape_cast %196 : vector<8x8xf32> to vector<1x8x8xf32>
    tpu.vector_store %arg7[%c0_66, %c0_67, %c0_68], %199 {strides = array<i32>} : memref<1x8x8xf32, #tpu.memory_space<vmem>>, vector<1x8x8xf32>,
    return
  }
  func.func @transform_0(%arg0: i32, %arg1: i32) -> (i32, i32, i32) {
    %c0_i32 = arith.constant 0 : i32
    %c0_i32_0 = arith.constant 0 : i32
    return %arg0, %arg1, %c0_i32 : i32, i32, i32
  }
  func.func @transform_1(%arg0: i32, %arg1: i32) -> (i32, i32, i32) {
    %c0_i32 = arith.constant 0 : i32
    %c0_i32_0 = arith.constant 0 : i32
    %c0_i32_1 = arith.constant 0 : i32
    return %arg0, %c0_i32, %c0_i32_0 : i32, i32, i32
  }
  func.func @transform_2(%arg0: i32, %arg1: i32) -> (i32, i32) {
    %c0_i32 = arith.constant 0 : i32
    %c0_i32_0 = arith.constant 0 : i32
    %c0_i32_1 = arith.constant 0 : i32
    return %c0_i32, %c0_i32_0 : i32, i32
  }
  func.func @transform_3(%arg0: i32, %arg1: i32) -> (i32, i32) {
    %c0_i32 = arith.constant 0 : i32
    %c0_i32_0 = arith.constant 0 : i32
    %c0_i32_1 = arith.constant 0 : i32
    return %c0_i32, %c0_i32_0 : i32, i32
  }
  func.func @transform_4(%arg0: i32, %arg1: i32) -> (i32, i32) {
    %c0_i32 = arith.constant 0 : i32
    %c0_i32_0 = arith.constant 0 : i32
    %c0_i32_1 = arith.constant 0 : i32
    return %c0_i32, %c0_i32_0 : i32, i32
  }
  func.func @transform_5(%arg0: i32, %arg1: i32) -> (i32, i32, i32) {
    %c0_i32 = arith.constant 0 : i32
    %c0_i32_0 = arith.constant 0 : i32
    return %arg0, %arg1, %c0_i32 : i32, i32, i32
  }
}

</mosaic_0001>

<bundles_post_ra>
// kernel: tpu_custom_call.1
= control target key start
LH: loop header
LB: loop body
LE: loop exit
PB: predicated region body
PF: predicated region fallthrough
CT: control target
= control target key end

     0   :  { %10 = vsyncpa [#allocation3], 0  ;;  %s1567_s0 = inlined_call_operand.vmem [shape: f32[4,8,32], index: 0, kind: input, shape index: {}]   ;;  %s1568_s1 = inlined_call_operand.hbm [shape: f32[4,8,32], index: 1, kind: input, shape index: {}]   ;;  %s1569_s2 = inlined_call_operand.hbm [shape: f32[32,32], index: 2, kind: input, shape index: {}]   ;;  %s1570_s3 = inlined_call_operand.vmem [shape: f32[32,16], index: 3, kind: input, shape index: {}]   ;;  %s1571_s4 = inlined_call_operand.vmem [shape: f32[8,8], index: 4, kind: input, shape index: {}]   ;;  %s1572_s5 = inlined_call_operand.hbm [shape: f32[4,8,8], index: 5, kind: output, shape index: {}]  }
   0x1   :  { %12 = vsyncpa [#allocation3 + $0x1], 0 }
   0x2   :  { %13 = vsyncpa [#allocation6], 0 }
   0x3   :  { %14 = vsyncpa [#allocation4], 0 }
   0x4   :  { %16 = vsyncpa [#allocation4 + $0x1], 0  ;;  %s1303_s18 = smov 0   ;;  %s1305_s19 = smov 0  }
   0x5   :  { %s1307_s20 = smov 0   ;;  %s1309_s21 = smov 0  }
   0x6   :  { %s1311_s22 = smov 0   ;;  %s1313_s23 = smov 0  }
   0x7 LB: > { %s893_s24 = sadd.s32 4294967295, %s1247_s23   ;;  %s894_s25 = sadd.s32 4294967294, %s1247_s23   ;;  %s1247_s23 = sphi %s1313_s23, %s22_s23   ;;  %s1243_s22 = sphi %s1311_s22, %s1595_s22   ;;  %s1239_s21 = sphi %s1309_s21, %s1594_s21   ;;  %s1235_s20 = sphi %s1307_s20, %s1593_s20   ;;  %s1231_s19 = sphi %s1305_s19, %s1592_s19   ;;  %s1227_s18 = sphi %s1303_s18, %s1591_s18  }
   0x8   : > { %p82_p0 = scmp.ne.s32.totalorder %s1231_s19, %s1227_s18  ;;  %p1337_p1 = scmp.eq.s32.totalorder %s893_s24, 0 }
   0x9   : > { %p1341_p2 = scmp.eq.s32.totalorder %s893_s24, 3  ;;  %p177_p3 = scmp.eq.s32.totalorder %s894_s25, 3 }
   0xa   : > { %s1577_s26 = scalar_select %p1337_p1, 1, 0 }
   0xb   : > { %s1578_s27 = scalar_select %p1341_p2, 1, 0 }
   0xc   : > { %p1347_p4 = por %p1337_p1, %p82_p0  ;;  %p895_p5 = scmp.ge.s32.totalorder %s1247_s23, 1 }
   0xd   : > { %p1352_p6 = por %p177_p3, %p82_p0  ;;  %p184_p7 = scmp.lt.s32.totalorder %s1247_s23, 5 }
   0xe   : > { %s1579_s28 = scalar_select %p1347_p4, 1, 0 }
   0xf   : > { %s1580_s29 = scalar_select %p1352_p6, 1, 0 }
  0x10   : > { %p1357_p8 = pnand %p895_p5, %p184_p7  ;;  %s1249_s6 = smov [#allocation5]  }
  0x11   : > { %s196_s7 = sshll.u32 %s1249_s6, 4  ;;  %s34_s9 = sadd.s32 1, %s1243_s22  ;;  %s197_s7 = int_to_ptr.vmem [resolvable:$true] %s196_s7 }
  0x12   : > { %s1581_s30 = scalar_select %p1357_p8, 1, 0 }
  0x13   : > { %p996_p9 = pneg %p1357_p8  ;;  %s1103_s12 = scalar_lea.hbm %s1569_s2, 512 }
  0x14   : > { %p1104_p11 = scmp.ne.s32.totalorder %s1569_s2, %s1103_s12  ;;  %p1110_p3 = scmp.lt.u32.totalorder %s1103_s12, %s1569_s2 }
  0x15   : > { %p1365_p10 = pnand %p996_p9, %p1337_p1 }
  0x17   : > { %p1105_p12 = pneg %p1365_p10 }
  0x19   : > { %p1106_p13 = pnand %p1105_p12, %p1104_p11 }
  0x1b   : > { %p1107_p0 = pneg %p1106_p13 }
  0x1d   : > { %p1112_p5 = pnand %p1110_p3, %p1107_p0 }
  0x1f   : > { %1115 = shalt.err (!%p1112_p5)
}
  0x20   : > { %s1116_s17 = scalar_lea.vmem %s197_s7, 512  ;;  %p1124_p1 = scmp.lt.s32.totalorder %s197_s7, %s197_s7 }
  0x21   : > { %p1117_p7 = scmp.ne.s32.totalorder %s197_s7, %s1116_s17  ;;  %p1125_p4 = scmp.lt.s32.totalorder %s1116_s17, %s1116_s17 }
  0x23   : > { %p1119_p9 = pnand %p1117_p7, %p1105_p12  ;;  %p1126_p8 = por %p1125_p4, %p1124_p1 }
  0x25   : > { %p1120_p6 = pneg %p1119_p9 }
  0x27   : > { %p1127_p2 = pnand %p1126_p8, %p1120_p6 }
  0x29   : > { %1130 = shalt.err (!%p1127_p2)
}
  0x2a   : > { %s1250_s24 = smov 128   ;;  %s1251_s25 = smov 8  }
  0x2b   : > { %999 = dma.hbm_to_vmem [thread:$0]  (!%p1365_p10), %s1569_s2, 512, %s197_s7, [#allocation6], %s1250_s24, %s1250_s24, %s1251_s25  }
  0x2c   : > { %p36_p1 = scmp.ge.s32.totalorder %s34_s9, 4  ;;  %s69_s11 = sadd.s32 1, %s1235_s20 }
  0x2d   : > { %p76_p2 = scmp.ne.s32.totalorder %s1235_s20, %s1231_s19  ;;  %p77_p4 = scmp.eq.s32.totalorder %s1247_s23, 0 }
  0x2e   : > { %s1597_s9 = smov (%p36_p1, %s34_s9), 0  ;;  %p1584_p8 = scmp.ne.s32.totalorder %s1578_s27, 0 }
  0x2f   : > { %p1392_p6 = por %p77_p4, %p76_p2  ;;  %s66_s8 = ssub.s32 %s1243_s22, %s1597_s9 }
  0x30   : > { %p1398_p11 = por %p1584_p8, %p76_p2  ;;  %p1009_p12 = scmp.lt.s32.totalorder %s1247_s23, 4 }
  0x31   : > { %p67_p10 = scmp.eq.s32.totalorder %s66_s8, 0  ;;  %s226_s7 = sand.u32 1, %s1235_s20  }
  0x32   : > { %s898_s14 = sshll.u32 %s226_s7, 3  ;;  %s899_s16 = sshll.u32 %s1243_s22, 7 }
  0x33   : > { %s1407_s15 = scalar_select %p67_p10, %s1235_s20, %s69_s11  }
  0x34   : > { %s1413_s25 = scalar_lea.hbm %s1568_s1, %s899_s16  ;;  %s230_s27 = scalar_lea.vmem [#allocation2], %s898_s14 }
  0x35   : > { %s237_s6 = sshll.u32 %s230_s27, 4  ;;  %p1419_p13 = pnand %p1009_p12, %p1392_p6  ;;  %s1415_s6 = int_to_ptr.vmem [resolvable:$true] %s237_s6 }
  0x36   : > { %s227_s11 = scalar_lea.sflag [#allocation3], %s226_s7  ;;  %s1131_s8 = scalar_lea.hbm %s1413_s25, 128 }
  0x37   : > { %p1132_p0 = scmp.ne.s32.totalorder %s1413_s25, %s1131_s8  ;;  %p1133_p3 = pneg %p1419_p13 }
  0x38   : > { %s1136_s17 = scalar_lea.hbm %s1568_s1, 512  ;;  %p1137_p9 = scmp.lt.u32.totalorder %s1413_s25, %s1568_s1 }
  0x39   : > { %p1134_p5 = pnand %p1133_p3, %p1132_p0  ;;  %p1138_p1 = scmp.lt.u32.totalorder %s1136_s17, %s1131_s8 }
  0x3a   : > { %p1140_p4 = scmp.lt.u32.totalorder %s1131_s8, %s1413_s25 }
  0x3b   : > { %p1135_p7 = pneg %p1134_p5  ;;  %p1139_p2 = por %p1138_p1, %p1137_p9 }
  0x3d   : > { %p1141_p6 = por %p1140_p4, %p1139_p2 }
  0x3f   : > { %p1142_p8 = pnand %p1141_p6, %p1135_p7 }
  0x41   : > { %1145 = shalt.err (!%p1142_p8)
}
  0x42   : > { %s1146_s7 = scalar_lea.vmem %s1415_s6, 128  ;;  %s1252_s27 = smov [#allocation2]  }
  0x43   : > { %p1147_p12 = scmp.ne.s32.totalorder %s1415_s6, %s1146_s7  ;;  %s1151_s14 = sshll.u32 %s1252_s27, 4  ;;  %s1152_s14 = int_to_ptr.vmem [resolvable:$false] %s1151_s14 }
  0x44   : > { %s1153_s16 = scalar_lea.vmem %s1152_s14, 256  ;;  %p1154_p5 = scmp.lt.s32.totalorder %s1415_s6, %s1152_s14 }
  0x45   : > { %p1149_p10 = pnand %p1147_p12, %p1133_p3  ;;  %p1155_p9 = scmp.lt.s32.totalorder %s1153_s16, %s1146_s7 }
  0x47   : > { %p1150_p0 = pneg %p1149_p10  ;;  %p1156_p1 = por %p1155_p9, %p1154_p5 }
  0x49   : > { %p1157_p2 = pnand %p1156_p1, %p1150_p0 }
  0x4b   : > { %1160 = shalt.err (!%p1157_p2)
}
  0x4c   : > { %1003 = dma.hbm_to_vmem [thread:$0]  (!%p1419_p13), %s1413_s25, 128, %s1415_s6, %s227_s11  }
  0x4d   : > { %p1587_p7 = scmp.ne.s32.totalorder %s1581_s30, 0 }
  0x4e   : > { %s1451_s8 = sand.u32 (!%p1587_p7), 1, %s1231_s19   ;;  %p1588_p3 = scmp.ne.s32.totalorder (!%p1587_p7), %s1579_s28, 0 }
  0x4f   : > { %246 = sbr.rel (%p1587_p7) target bundleno = 822 (0x336), region = 40  ;;  %s901_s17 = sshll.u32 (!%p1587_p7), %s1451_s8, 3 }
  0x50   : > { %s249_s12 = scalar_lea.sflag (!%p1587_p7), [#allocation3], %s1451_s8  ;;  %s252_s24 = scalar_lea.vmem (!%p1587_p7), [#allocation2], %s901_s17 }
  0x56   : > { %1214 = dma.done.wait (%p1588_p3), %s249_s12, 128  }
  0x57   : > { %1216 = vsyncadd (%p1588_p3), %s249_s12, 4294967168  ;;  %p1589_p13 = scmp.ne.s32.totalorder %s1577_s26, 0 }
  0x59   : > { %1218 = dma.done.wait (%p1589_p13), [#allocation6], 512  }
  0x5a   : > { %1220 = vsyncadd (%p1589_p13), [#allocation6], 4294966784  ;;  %v1253_v0 = vmov 0.0|0.0   ;;  %vm1254_vm0 = vmmov 0   ;;  %v1255_v1 = vmov 0.0   ;;  %v299_v2 = vld [vmem:[#allocation5] sm:$0xff] }
  0x5b   : > { %976 = vmatprep.subr.bf16.mxu0 %v1253_v0  ;;  %952 = vmatprep.mubr.msk.f32.mxu0 %vm1254_vm0, %v1255_v1  ;;  %v300_v3 = vld [vmem:[#allocation5 + $0x8] sm:$0xff]  ;;  %v301_v4 = vld [vmem:[#allocation5 + $0x10] sm:$0xff]  ;;  %v302_v6 = vld [vmem:[#allocation5 + $0x18] sm:$0xff]  ;;  %vm308_vm1 = vcmask 261120   ;;  %p290_p4 = scmp.lt.s32.totalorder %s1239_s21, 3  ;;  %v1256_v21 = vmov 2  }
  0x5c   : > { %955 = vmatprep.subr.mxu1 %v1255_v1  ;;  %957 = vmatprep.mubr.msk.f32.mxu1 %vm1254_vm0, %v1255_v1  ;;  %v977_v5 = vpack.c.bf16 %v300_v3, %v299_v2  ;;  %v980_v7 = vpack.c.bf16 %v302_v6, %v301_v4  ;;  %v298_v8 = vld [vmem:[%s252_s24] sm:$0xff]  ;;  %v305_v11 = vld [vmem:[%s1570_s3 + $0x10] sm:$0xff]  ;;  %v306_v13 = vld [vmem:[%s1570_s3 + $0x18] sm:$0xff]  ;;  %v1257_v23 = vmov 0   ;;  %v1258_v24 = vmov 3   ;;  %s927_s30 = sshll.u32 %s1239_s21, 7 }
  0x5d   : > { %s291_s26 = scalar_select %p290_p4, %s1239_s21, 3  ;;  %v303_v9 = vld [vmem:[%s1570_s3] sm:$0xff]  ;;  %v304_v10 = vld [vmem:[%s1570_s3 + $0x8] sm:$0xff]  ;;  %v986_v14 = vpack.c.bf16 %v306_v13, %v305_v11  ;;  %1084 = vset.pattern.permute.xlu1 %v1256_v21  ;;  %1082 = vset.pattern.permute.xlu0 %v1257_v23  ;;  %v1259_v25 = vmov 1   ;;  %v1260_v26 = vmov 4   ;;  %v1261_v27 = vmov 5  }
  0x5e   : > { %978 = vmatpush3.bf16.msra.mxu0 %v977_v5  ;;  %v983_v12 = vpack.c.bf16 %v304_v10, %v303_v9  ;;  %v307_v19 = vld [vmem:[%s1571_s4] sm:$0xff]  ;;  %v1262_v28 = vmov 6   ;;  %v1263_v29 = vmov 8   ;;  %v1264_v30 = vmov 7   ;;  %s289_s25 = scalar_lea.vmem [#allocation7], %s901_s17  ;;  %s1518_s7 = scalar_lea.hbm %s1572_s5, %s927_s30 }
  0x5f   : > { %979 = vmatprep.subr.bf16.mxu0 %v1253_v0  ;;  %s904_s14 = sshll.u32 %s291_s26, 3  ;;  %v1265_v31 = vmov 11   ;;  %v1266_v32 = vmov 9   ;;  %v1267_v33 = vmov 14   ;;  %v1268_v34 = vmov 10   ;;  %s789_s6 = sshll.u32 %s289_s25, 4  ;;  %s1520_s6 = int_to_ptr.vmem [resolvable:$true] %s789_s6 }
  0x60   : > { %s296_s24 = scalar_lea.vmem %s1567_s0, %s904_s14  ;;  %v1269_v35 = vmov 15   ;;  %v1270_v36 = vmov 12   ;;  %v1271_v37 = vmov 13   ;;  %vm465_vm2 = vcmask 64512   ;;  %s775_s27 = scalar_lea.sflag [#allocation4], %s1451_s8 }
  0x61   : > { %v297_v15 = vld [vmem:[%s296_s24] sm:$0xff]  ;;  %s1161_s21 = scalar_lea.vmem %s1520_s6, 128  ;;  %s1272_s17 = smov [#allocation7]  }
  0x62   : > { %981 = vmatpush3.bf16.msra.mxu0 %v980_v7  ;;  %v382_v17 = vmul.f32 0.17677669, %v297_v15  ;;  %p1162_p6 = scmp.ne.s32.totalorder %s1520_s6, %s1161_s21  ;;  %s1165_s14 = sshll.u32 %s1272_s17, 4  ;;  %s1166_s14 = int_to_ptr.vmem [resolvable:$false] %s1165_s14 }
  0x63   : > { %982 = vmatprep.subr.bf16.mxu0 %v1253_v0  ;;  %s1167_s16 = scalar_lea.vmem %s1166_s14, 256  ;;  %p1168_p10 = scmp.lt.s32.totalorder %s1520_s6, %s1166_s14 }
  0x64   : > { %p1163_p8 = pnand %p1162_p6, %p1398_p11  ;;  %p1169_p0 = scmp.lt.s32.totalorder %s1167_s16, %s1161_s21 }
  0x65   : > { %953 = vmatmul.mubr.msk.f32.vlgmr.msra.gmra.mrb[0].mxu0 %vm308_vm1, %v298_v8 }
  0x66   : > { %973 = vmatprep.mubr.msk.f32.mxu0 %vm1254_vm0, %v1255_v1  ;;  %984 = vmatpush3.bf16.msra.mxu0 %v983_v12  ;;  %p1164_p12 = pneg %p1163_p8  ;;  %p1170_p5 = por %p1169_p0, %p1168_p10 }
  0x67   : > { %985 = vmatprep.subr.bf16.mxu0 %v1253_v0 }
  0x68   : > { %p1171_p9 = pnand %p1170_p5, %p1164_p12 }
  0x6a   : > { %987 = vmatpush3.bf16.msra.mxu0 %v986_v14 }
  0x6d   : > { %974 = vmatmul.mubr.msk.f32.vlgmr.msra.gmra.mrb[2].mxu0 %vm308_vm1, %v297_v15 }
 0x138   : > { %v378_v16 = vpop.f32.mrb[0].mxu0 }
 0x139   : > { %v954_v18 = vpop.f32.mrb[1].mxu0  ;;  %956 = vmatpush3.xpose.msk.msra.mxu1 %vm308_vm1, %v378_v16 }
 0x13a   : > { %960 = vmatprep.subr.mxu1 %v1255_v1 }
 0x13c   : > { %958 = vmatmul.mubr.msk.f32.vlgmr.msra.gmra.mrb[0].mxu1 %vm308_vm1, %v382_v17 }
 0x13d   : > { %962 = vmatprep.mubr.msk.f32.mxu1 %vm1254_vm0, %v1255_v1  ;;  %961 = vmatpush3.msra.mxu1 %v307_v19 }
 0x140   : > { %v609_v20 = vpop.f32.mrb[2].mxu0 }
 0x141   : > { %v975_v22 = vpop.f32.mrb[3].mxu0  ;;  %638 = vperm.xlu1 %1084, %v609_v20   ;;  %618 = vperm.xlu0 %1082, %v609_v20  }
 0x145   : > { %1085 = vset.pattern.permute.xlu1 %v1258_v24  ;;  %1083 = vset.pattern.permute.xlu0 %v1259_v25 }
 0x146   : > { %648 = vperm.xlu1 %1085, %v609_v20   ;;  %628 = vperm.xlu0 %1083, %v609_v20  }
 0x14a   : > { %1086 = vset.pattern.permute.xlu1 %v1260_v26  ;;  %1087 = vset.pattern.permute.xlu0 %v1261_v27 }
 0x14b   : > { %658 = vperm.xlu1 %1086, %v609_v20   ;;  %668 = vperm.xlu0 %1087, %v609_v20  }
 0x14f   : > { %1088 = vset.pattern.permute.xlu1 %v1262_v28  ;;  %1090 = vset.pattern.permute.xlu0 %v1263_v29 }
 0x150   : > { %678 = vperm.xlu1 %1088, %v609_v20   ;;  %698 = vperm.xlu0 %1090, %v609_v20  }
 0x154   : > { %1089 = vset.pattern.permute.xlu1 %v1264_v30  ;;  %1093 = vset.pattern.permute.xlu0 %v1265_v31 }
 0x155   : > { %688 = vperm.xlu1 %1089, %v609_v20   ;;  %728 = vperm.xlu0 %1093, %v609_v20  }
 0x159   : > { %1091 = vset.pattern.permute.xlu1 %v1266_v32  ;;  %1096 = vset.pattern.permute.xlu0 %v1267_v33 }
 0x15a   : > { %708 = vperm.xlu1 %1091, %v609_v20   ;;  %758 = vperm.xlu0 %1096, %v609_v20  }
 0x15e   : > { %1092 = vset.pattern.permute.xlu1 %v1268_v34  ;;  %1098 = vset.pattern.permute.xlu0 %v1269_v35 }
 0x15f   : > { %718 = vperm.xlu1 %1092, %v609_v20  }
 0x163   : > { %1094 = vset.pattern.permute.xlu1 %v1270_v36 }
 0x164   : > { %738 = vperm.xlu1 %1094, %v609_v20  }
 0x168   : > { %1095 = vset.pattern.permute.xlu1 %v1271_v37 }
 0x169   : > { %748 = vperm.xlu1 %1095, %v609_v20  }
 0x16d   : > { %1097 = vset.pattern.permute.xlu1 %v1269_v35 }
 0x16e   : > { %768 = vperm.xlu1 %1097, %v609_v20  }
 0x1c0   : > { %v639_v44 = vpop.permute.xlu1 %638  ;;  %v619_v55 = vpop.permute.xlu0 %618 }
 0x1c5   : > { %v649_v45 = vpop.permute.xlu1 %648  ;;  %v629_v12 = vpop.permute.xlu0 %628 }
 0x1ca   : > { %v659_v46 = vpop.permute.xlu1 %658  ;;  %v669_v34 = vpop.permute.xlu0 %668 }
 0x1cf   : > { %v679_v50 = vpop.permute.xlu1 %678 }
 0x1d4   : > { %v689_v5 = vpop.permute.xlu1 %688 }
 0x1d9   : > { %v709_v24 = vpop.permute.xlu1 %708 }
 0x20f   : > { %v455_v38 = vpop.f32.mrb[0].mxu1 }
 0x210   : > { %v908_v39 = vmul.f32 -1.442695, %v455_v38  ;;  %v959_v40 = vpop.f32.mrb[1].mxu1 }
 0x212   : > { %1099 = vpow2.f32 %v908_v39 }
 0x21c   : > { %v1100_v41 = vpop.eup %1099 }
 0x21d   : > { %v462_v42 = vadd.f32 1.0, %v1100_v41 }
 0x21f   : > { %1101 = vrcp.f32 %v462_v42 }
 0x229   : > { %v1102_v43 = vpop.eup %1101 }
 0x22a   : > { %963 = vmatmul.mubr.msk.f32.vlgmr.msra.gmra.mrb[2].mxu1 %vm465_vm2, %v1102_v43 }
 0x2fd   : > { %v535_v47 = vpop.f32.mrb[2].mxu1 }
 0x2fe   : > { %v1494_v48 = vmin.f32 %v535_v47, 15.0  ;;  %v964_v49 = vpop.f32.mrb[3].mxu1  ;;  %v719_v47 = vpop.permute.xlu1 %718 }
 0x300   : > { %v613_v51 = vand.u32 2147483647, %v1494_v48  ;;  %v911_v52 = vadd.f32 -1.0, %v1494_v48  ;;  %v912_v53 = vadd.f32 -2.0, %v1494_v48  ;;  %v913_v54 = vadd.f32 -3.0, %v1494_v48 }
 0x301   : > { %v914_v56 = vadd.f32 -4.0, %v1494_v48  ;;  %v915_v57 = vadd.f32 -5.0, %v1494_v48  ;;  %v916_v58 = vadd.f32 -6.0, %v1494_v48  ;;  %v917_v62 = vadd.f32 -7.0, %v1494_v48 }
 0x302   : > { %v614_v59 = vsub.f32 1.0, %v613_v51  ;;  %v624_v60 = vand.u32 2147483647, %v911_v52  ;;  %v634_v61 = vand.u32 2147483647, %v912_v53  ;;  %v918_v8 = vadd.f32 -8.0, %v1494_v48 }
 0x303   : > { %v644_v63 = vand.u32 2147483647, %v913_v54  ;;  %v654_v0 = vand.u32 2147483647, %v914_v56  ;;  %v664_v1 = vand.u32 2147483647, %v915_v57  ;;  %v699_v56 = vpop.permute.xlu0 %698 }
 0x304   : > { %v615_v2 = vmax.f32 %v614_v59, 0.0  ;;  %v625_v3 = vsub.f32 1.0, %v624_v60  ;;  %v635_v4 = vsub.f32 1.0, %v634_v61  ;;  %v674_v7 = vand.u32 2147483647, %v916_v58 }
 0x305   : > { %v645_v6 = vsub.f32 1.0, %v644_v63  ;;  %v655_v11 = vsub.f32 1.0, %v654_v0  ;;  %v665_v13 = vsub.f32 1.0, %v664_v1  ;;  %v684_v14 = vand.u32 2147483647, %v917_v62 }
 0x306   : > { %v626_v9 = vmax.f32 %v625_v3, 0.0  ;;  %v636_v10 = vmax.f32 %v635_v4, 0.0  ;;  %v621_v15 = vmul.f32 %v619_v55, %v615_v2  ;;  %v675_v18 = vsub.f32 1.0, %v674_v7 }
 0x307   : > { %v646_v17 = vmax.f32 %v645_v6, 0.0  ;;  %v694_v19 = vand.u32 2147483647, %v918_v8  ;;  %v656_v22 = vmax.f32 %v655_v11, 0.0  ;;  %v919_v23 = vadd.f32 -9.0, %v1494_v48  ;;  %v729_v11 = vpop.permute.xlu0 %728 }
 0x308   : > { %v631_v16 = vmul.f32 %v629_v12, %v626_v9  ;;  %v641_v21 = vmul.f32 %v639_v44, %v636_v10  ;;  %v666_v25 = vmax.f32 %v665_v13, 0.0  ;;  %v685_v26 = vsub.f32 1.0, %v684_v14 }
 0x309   : > { %v920_v27 = vadd.f32 -10.0, %v1494_v48  ;;  %v651_v29 = vmul.f32 %v649_v45, %v646_v17  ;;  %v704_v30 = vand.u32 2147483647, %v919_v23  ;;  %v921_v31 = vadd.f32 -11.0, %v1494_v48 }
 0x30a   : > { %v632_v20 = vadd.f32 %v631_v16, %v621_v15  ;;  %v676_v32 = vmax.f32 %v675_v18, 0.0  ;;  %v695_v33 = vsub.f32 1.0, %v694_v19  ;;  %v661_v36 = vmul.f32 %v659_v46, %v656_v22 }
 0x30b   : > { %v714_v37 = vand.u32 2147483647, %v920_v27  ;;  %v922_v38 = vadd.f32 -12.0, %v1494_v48  ;;  %v686_v39 = vmax.f32 %v685_v26, 0.0  ;;  %v923_v40 = vadd.f32 -13.0, %v1494_v48  ;;  %v759_v22 = vpop.permute.xlu0 %758 }
 0x30c   : > { %v642_v28 = vadd.f32 %v641_v21, %v632_v20  ;;  %v671_v42 = vmul.f32 %v669_v34, %v666_v25  ;;  %v705_v43 = vsub.f32 1.0, %v704_v30  ;;  %v724_v44 = vand.u32 2147483647, %v921_v31 }
 0x30d   : > { %v681_v45 = vmul.f32 %v679_v50, %v676_v32  ;;  %v696_v49 = vmax.f32 %v695_v33, 0.0  ;;  %v715_v52 = vsub.f32 1.0, %v714_v37  ;;  %v734_v53 = vand.u32 2147483647, %v922_v38  ;;  %v739_v50 = vpop.permute.xlu1 %738 }
 0x30e   : > { %v652_v35 = vadd.f32 %v651_v29, %v642_v28  ;;  %v924_v54 = vadd.f32 -14.0, %v1494_v48  ;;  %v691_v55 = vmul.f32 %v689_v5, %v686_v39  ;;  %v744_v46 = vand.u32 2147483647, %v923_v40 }
 0x30f   : > { %v706_v58 = vmax.f32 %v705_v43, 0.0  ;;  %v725_v59 = vsub.f32 1.0, %v724_v44  ;;  %v925_v60 = vadd.f32 -15.0, %v1494_v48  ;;  %v701_v61 = vmul.f32 %v699_v56, %v696_v49 }
 0x310   : > { %v662_v41 = vadd.f32 %v661_v36, %v652_v35  ;;  %v716_v63 = vmax.f32 %v715_v52, 0.0  ;;  %v735_v0 = vsub.f32 1.0, %v734_v53  ;;  %v754_v1 = vand.u32 2147483647, %v924_v54 }
 0x311   : > { %v745_v2 = vsub.f32 1.0, %v744_v46  ;;  %v711_v4 = vmul.f32 %v709_v24, %v706_v58  ;;  %v726_v6 = vmax.f32 %v725_v59, 0.0  ;;  %v764_v7 = vand.u32 2147483647, %v925_v60  ;;  %v749_v15 = vpop.permute.xlu1 %748 }
 0x312   : > { %v672_v51 = vadd.f32 %v671_v42, %v662_v41  ;;  %v721_v5 = vmul.f32 %v719_v47, %v716_v63  ;;  %v736_v9 = vmax.f32 %v735_v0, 0.0  ;;  %v755_v10 = vsub.f32 1.0, %v754_v1 }
 0x313   : > { %v731_v48 = vmul.f32 %v729_v11, %v726_v6  ;;  %v746_v13 = vmax.f32 %v745_v2, 0.0  ;;  %v765_v14 = vsub.f32 1.0, %v764_v7 }
 0x314   : > { %v682_v57 = vadd.f32 %v681_v45, %v672_v51  ;;  %v741_v17 = vmul.f32 %v739_v50, %v736_v9  ;;  %v756_v18 = vmax.f32 %v755_v10, 0.0 }
 0x315   : > { %v751_v20 = vmul.f32 %v749_v15, %v746_v13  ;;  %v766_v21 = vmax.f32 %v765_v14, 0.0  ;;  %v769_v25 = vpop.permute.xlu1 %768 }
 0x316   : > { %v692_v62 = vadd.f32 %v691_v55, %v682_v57  ;;  %v761_v24 = vmul.f32 %v759_v22, %v756_v18 }
 0x317   : > { %v771_v27 = vmul.f32 %v769_v25, %v766_v21 }
 0x318   : > { %v702_v3 = vadd.f32 %v701_v61, %v692_v62 }
 0x31a   : > { %v712_v8 = vadd.f32 %v711_v4, %v702_v3 }
 0x31c   : > { %v722_v12 = vadd.f32 %v721_v5, %v712_v8 }
 0x31e   : > { %v732_v16 = vadd.f32 %v731_v48, %v722_v12 }
 0x320   : > { %v742_v19 = vadd.f32 %v741_v17, %v732_v16 }
 0x322   : > { %v752_v23 = vadd.f32 %v751_v20, %v742_v19 }
 0x324   : > { %v762_v26 = vadd.f32 %v761_v24, %v752_v23 }
 0x326   : > { %v772_v28 = vadd.f32 %v771_v27, %v762_v26 }
 0x328   : > { %773 = vst.msk [vmem:[%s289_s25] sm:$0xff] %vm465_vm2, %v772_v28 }
 0x329   : > { %1174 = shalt.err (!%p1171_p9)
}
 0x32a   : > { %s1175_s8 = scalar_lea.hbm %s1518_s7, 128  ;;  %s1179_s26 = scalar_lea.hbm %s1572_s5, 512 }
 0x32b   : > { %p1176_p1 = scmp.ne.s32.totalorder %s1518_s7, %s1175_s8  ;;  %p1180_p3 = scmp.lt.u32.totalorder %s1518_s7, %s1572_s5 }
 0x32c   : > { %p1181_p13 = scmp.lt.u32.totalorder %s1179_s26, %s1175_s8  ;;  %p1183_p6 = scmp.lt.u32.totalorder %s1175_s8, %s1518_s7 }
 0x32d   : > { %p1177_p2 = pnand %p1176_p1, %p1398_p11 }
 0x32e   : > { %p1182_p4 = por %p1181_p13, %p1180_p3 }
 0x32f   : > { %p1178_p7 = pneg %p1177_p2 }
 0x330   : > { %p1184_p8 = por %p1183_p6, %p1182_p4 }
 0x332   : > { %p1185_p12 = pnand %p1184_p8, %p1178_p7 }
 0x334   : > { %1188 = shalt.err (!%p1185_p12)
}
 0x335   : > { %994 = dma.vmem_to_hbm [thread:$0]  (%p1398_p11), %s1520_s6, 128, %s1518_s7, %s775_s27  }
 0x336 PF: > { %p1011_p10 = scmp.ge.s32.totalorder %s1247_s23, 2  ;;  %s801_s25 = sand.u32 1, %s1227_s18  }
 0x337   : > { %p1590_p0 = scmp.ne.s32.totalorder %s1580_s29, 0  ;;  %s802_s10 = scalar_lea.sflag [#allocation4], %s801_s25 }
 0x339   : > { %p1005_p5 = pnand %p1011_p10, %p1590_p0 }
 0x33b   : > { %1222 = dma.done.wait (!%p1005_p5), %s802_s10, 128  }
 0x33c   : > { %1224 = vsyncadd (!%p1005_p5), %s802_s10, 4294967168  ;;  %s22_s23 = sadd.s32 1, %s1247_s23   ;;  %s1591_s18 = smov %s1231_s19 }
 0x33d   : > { %p19_p9 = scmp.ge.s32.totalorder %s22_s23, 6   ;;  %s1592_s19 = smov %s1235_s20 }
 0x33e   : > { %s1593_s20 = smov %s1407_s15  ;;  %s1594_s21 = smov %s1243_s22 }
 0x33f   : > { %s1595_s22 = smov %s1597_s9  ;;  %21 = sbr.rel (!%p19_p9) target bundleno = 7 (0x7), region = 92 }
 0x346   :  { %807 = vsyncpa [#allocation3], 1 }
 0x347   :  { %809 = vsyncpa [#allocation3 + $0x1], 1 }
 0x348   :  { %810 = vsyncpa [#allocation6], 1 }
 0x349   :  { %811 = vsyncpa [#allocation4], 1 }
 0x34a   :  { %813 = vsyncpa [#allocation4 + $0x1], 1 }

</bundles_post_ra>
